<compile_context>
chip_gen: v7x
topology: tpu7x:2x2x1
jax: 0.10.0
libtpu: 0.0.40
codegen_flags: <defaults>
</compile_context>

<pallas_src>
import jax
import jax.numpy as jnp
from jax.experimental import pallas as pl
from jax.experimental.pallas import tpu as pltpu

LANES = 128
SUBLANES = 8
# In-kernel strip size: bounds the sub/square temporaries to ~0.5 MiB f32.
CHUNK_ROWS = 512


def _device_profile():
    """Tile/shard parameters keyed off the local TPU generation."""
    kind = ""
    try:
        kind = jax.devices()[0].device_kind.lower()
    except Exception:
        pass
    if "v7" in kind:
        # 2 TensorCores/chip, 3.2 TB/s HBM: big tiles + a real 2-way core split.
        # TODO(synk): if an xprof trace shows exposed DMA at step boundaries,
        # sweep pipeline_mode=pl.Buffered(3) on the two input BlockSpecs.
        return dict(num_shards=2, block_bytes=4 * 1024 * 1024,
                    vmem_limit_bytes=40 * 1024 * 1024, core_parallel=True)
    if "v6" in kind:
        # 1 TensorCore, 32 MiB default scoped VMEM (128 MiB physical).
        return dict(num_shards=1, block_bytes=4 * 1024 * 1024,
                    vmem_limit_bytes=40 * 1024 * 1024, core_parallel=False)
    # v5e / unknown: conservative — default scoped VMEM may be 16 MiB, so cap
    # the aggregate double-buffered input footprint at 8 MiB.
    return dict(num_shards=1, block_bytes=2 * 1024 * 1024,
                vmem_limit_bytes=None, core_parallel=False)


def _make_mse_partial_kernel(block_rows, chunk_rows, steps_per_shard,
                             valid_rows, needs_mask):
    num_chunks = block_rows // chunk_rows

    def chunk_partial(a_ref, b_ref, r, row0, masked):
        if num_chunks == 1:
            da = a_ref[...]
            db = b_ref[...]
        else:
            da = a_ref[pl.ds(r, chunk_rows), :]
            db = b_ref[pl.ds(r, chunk_rows), :]
        d = da.astype(jnp.float32) - db.astype(jnp.float32)
        if masked:
            # Zero invalid (out-of-range / clamped-overhang) rows BEFORE
            # squaring so NaN/Inf garbage in the partial block cannot leak in.
            row_ids = row0 + r + jax.lax.broadcasted_iota(
                jnp.int32, (chunk_rows, LANES), 0)
            d = jnp.where(row_ids < valid_rows, d, 0.0)
        sq = d * d
        # VPU-only partial accumulation into a vreg-shaped (8, 128) slab; the
        # cross-sublane/cross-lane reduce is deferred to the JAX epilogue.
        return jnp.sum(sq.reshape(chunk_rows // SUBLANES, SUBLANES, LANES),
                       axis=0)

    def accumulate(o_ref, a_ref, b_ref, row0, masked):
        if num_chunks == 1:
            acc = chunk_partial(a_ref, b_ref, 0, row0, masked)
        else:
            def body(k, carry):
                r = pl.multiple_of(k * chunk_rows, chunk_rows)
                return carry + chunk_partial(a_ref, b_ref, r, row0, masked)
            acc = jax.lax.fori_loop(
                0, num_chunks, body, jnp.zeros((SUBLANES, LANES), jnp.float32))
        o_ref[...] += acc.reshape(1, SUBLANES, LANES)

    def kernel(a_ref, b_ref, o_ref):
        i = pl.program_id(1)

        # Zero this shard's resident accumulator on its first reduction step.
        @pl.when(i == 0)
        def _():
            o_ref[...] = jnp.zeros_like(o_ref)

        if not needs_mask:
            accumulate(o_ref, a_ref, b_ref, 0, masked=False)
        else:
            s = pl.program_id(0)
            # Logical (unclamped) first row of this step; clamped/overhanging
            # steps have row0 >= valid_rows and contribute exactly 0.
            row0 = (s * steps_per_shard + i) * block_rows
            is_ragged = row0 + block_rows > valid_rows

            # Gate the mask work: interior steps run the cheap unmasked path.
            @pl.when(jnp.logical_not(is_ragged))
            def _():
                accumulate(o_ref, a_ref, b_ref, row0, masked=False)

            @pl.when(is_ragged)
            def _():
                accumulate(o_ref, a_ref, b_ref, row0, masked=True)

    return kernel


def mse_loss_pallas(output_data: jax.Array, model_output: jax.Array, *,
                    max_block_rows: int | None = None,
                    num_shards: int | None = None) -> jax.Array:
    """Mean squared error between model_output and output_data (scalar f32)."""
    assert output_data.shape == model_output.shape, "shapes must match"
    n_elems = output_data.size
    if n_elems == 0:
        # Matches torch.nn.MSELoss(reduction='mean') on empty inputs.
        return jnp.float32(jnp.nan)

    profile = _device_profile()
    auto_shards = num_shards is None
    if auto_shards:
        num_shards = profile["num_shards"]

    a = output_data.reshape(-1)
    b = model_output.reshape(-1)

    itemsize_a = jnp.dtype(output_data.dtype).itemsize
    itemsize_b = jnp.dtype(model_output.dtype).itemsize

    # Lane-aligned bulk goes through the kernel; the <=127-element tail is
    # summed here (tiny) instead of materializing padded copies of both inputs.
    bulk = (n_elems // LANES) * LANES
    tail_sq_sum = jnp.float32(0.0)
    if bulk != n_elems:
        ta = a[bulk:].astype(jnp.float32)
        tb = b[bulk:].astype(jnp.float32)
        tail_sq_sum = jnp.sum((ta - tb) ** 2)
    if bulk == 0:
        return tail_sq_sum * (1.0 / float(n_elems))

    rows = bulk // LANES
    a2 = a[:bulk].reshape(rows, LANES)
    b2 = b[:bulk].reshape(rows, LANES)

    # dtype-native sublane packing: 8 rows f32, 16 bf16, 32 int8/fp8.
    row_quantum = SUBLANES * max(1, 4 // min(itemsize_a, itemsize_b))
    bytes_per_row = LANES * max(itemsize_a, itemsize_b)

    if max_block_rows is None:
        max_block_rows = profile["block_bytes"] // bytes_per_row
    max_block_rows = max(row_quantum,
                         (max_block_rows // row_quantum) * row_quantum)

    # Keep large blocks a multiple of CHUNK_ROWS so the in-kernel strip-mining
    # divides evenly; small inputs round to the packing quantum only.
    block_quantum = CHUNK_ROWS if rows > CHUNK_ROWS else row_quantum
    block_rows = min(max_block_rows, pl.cdiv(rows, block_quantum) * block_quantum)
    chunk_rows = CHUNK_ROWS if (block_rows % CHUNK_ROWS == 0
                                and block_rows > CHUNK_ROWS) else block_rows

    num_blocks = pl.cdiv(rows, block_rows)
    num_shards = max(1, min(num_shards, num_blocks))
    steps_per_shard = pl.cdiv(num_blocks, num_shards)
    # Mask only needed when the (sharded) grid over-covers the row range.
    needs_mask = (num_shards * steps_per_shard * block_rows) != rows

    def in_index_map(s, i):
        # Clamp so overhanging shard steps re-read a valid block; their
        # contribution is zeroed by the in-kernel logical-row mask.
        blk = jnp.minimum(s * steps_per_shard + i, num_blocks - 1)
        return (blk, 0)

    # Dimension semantics: make the shard split real on v7x (CORE_PARALLEL);
    # a 1-sized shard axis on single-TC chips stays a free "arbitrary" axis.
    if num_shards > 1 and auto_shards and profile["core_parallel"]:
        dims = (getattr(pltpu, "CORE_PARALLEL", "parallel"),
                getattr(pltpu, "ARBITRARY", "arbitrary"))
    elif num_shards > 1:
        dims = ("parallel", "arbitrary")
    else:
        dims = ("arbitrary", "arbitrary")

    cp_kwargs = dict(dimension_semantics=dims)
    if profile["vmem_limit_bytes"] is not None:
        cp_kwargs["vmem_limit_bytes"] = profile["vmem_limit_bytes"]

    partials = pl.pallas_call(
        _make_mse_partial_kernel(block_rows, chunk_rows, steps_per_shard,
                                 rows, needs_mask),
        out_shape=jax.ShapeDtypeStruct((num_shards, SUBLANES, LANES),
                                       jnp.float32),
        grid_spec=pltpu.PrefetchScalarGridSpec(
            num_scalar_prefetch=0,
            grid=(num_shards, steps_per_shard),
            in_specs=[
                pl.BlockSpec((block_rows, LANES), in_index_map),
                pl.BlockSpec((block_rows, LANES), in_index_map),
            ],
            out_specs=pl.BlockSpec((1, SUBLANES, LANES), lambda s, i: (s, 0, 0)),
        ),
        compiler_params=pltpu.CompilerParams(**cp_kwargs),
        cost_estimate=pl.CostEstimate(
            flops=3 * bulk,
            transcendentals=0,
            bytes_accessed=bulk * (itemsize_a + itemsize_b)
            + num_shards * SUBLANES * LANES * 4,
        ),
    )(a2, b2)

    # Tiny epilogue: combine shard partials, add the unaligned tail, and
    # normalize by the true element count.
    return (jnp.sum(partials) + tail_sq_sum) * (1.0 / float(n_elems))


class MODELLossPallas:
    """JAX/Pallas equivalent of the PyTorch MODELLoss forward pass."""

    def __call__(self, output_data, model_output):
        return mse_loss_pallas(output_data, model_output)

    # TODO(synk): update_center relies on torch.distributed all_reduce and
    # persistent module state; it is not part of the forward pass and is
    # omitted here.


if __name__ == "__main__":
    key = jax.random.PRNGKey(0)
    k1, k2, k3, k4 = jax.random.split(key, 4)

    # Small shapes consistent with the forward (two same-shaped tensors).
    shape = (2, 4, 16, 16)  # batch=2, channels=4, spatial=16x16
    output_data = jax.random.normal(k1, shape, dtype=jnp.float32)
    model_output = jax.random.normal(k2, shape, dtype=jnp.float32)

    loss_fn = MODELLossPallas()
    loss = jax.block_until_ready(loss_fn(output_data, model_output))
    ref = jnp.mean((model_output - output_data) ** 2)
    assert jnp.allclose(loss, ref, rtol=1e-5, atol=1e-6), (loss, ref)

    # Lane-unaligned size: exercises the no-pad tail epilogue and the
    # pl.when-gated ragged-row mask on a partial block.
    a_tail = jax.random.normal(k3, (5000,), dtype=jnp.float32)
    b_tail = jax.random.normal(k4, (5000,), dtype=jnp.float32)
    loss2 = jax.block_until_ready(mse_loss_pallas(a_tail, b_tail))
    ref2 = jnp.mean((b_tail - a_tail) ** 2)
    assert jnp.allclose(loss2, ref2, rtol=1e-5, atol=1e-6), (loss2, ref2)

    # Odd num_blocks + forced 2-way shard + rows % block_rows != 0: exercises
    # the clamped index_map and the masked overhang path.
    loss3 = jax.block_until_ready(
        mse_loss_pallas(a_tail, b_tail, max_block_rows=8, num_shards=2))
    assert jnp.allclose(loss3, ref2, rtol=1e-5, atol=1e-6), (loss3, ref2)

    print("KERNEL_OK")
</pallas_src>

<mosaic_0001>
module attributes {stable_mosaic.version = 11 : i64} {
  func.func @kernel(%arg0: i32, %arg1: i32, %arg2: memref<16x128xf32, #tpu.memory_space<vmem>>, %arg3: memref<16x128xf32, #tpu.memory_space<vmem>>, %arg4: memref<1x8x128xf32, #tpu.memory_space<vmem>>) attributes {dimension_semantics = [#tpu.dimension_semantics<arbitrary>, #tpu.dimension_semantics<arbitrary>], iteration_bounds = array<i64: 1, 1>, scalar_prefetch = 0 : i64, scratch_operands = 0 : i64, tpu.core_type = #tpu.core_type<tc>, window_params = [{transform_indices = @transform_0, window_bounds = array<i64: 16, 128>}, {transform_indices = @transform_1, window_bounds = array<i64: 16, 128>}, {transform_indices = @transform_2, window_bounds = array<i64: 1, 8, 128>}]} {
    %c0_i32 = arith.constant 0 : i32
    %0 = arith.cmpi eq, %arg1, %c0_i32 : i32
    %1 = arith.extui %0 : i1 to i32
    %c0_i32_0 = arith.constant 0 : i32
    %2 = arith.cmpi ne, %1, %c0_i32_0 : i32
    scf.if %2 {
      %cst_10 = arith.constant 0.000000e+00 : f32
      %13 = vector.broadcast %cst_10 : f32 to vector<1x8x128xf32>
      %c0_11 = arith.constant 0 : index
      %c0_12 = arith.constant 0 : index
      %c0_13 = arith.constant 0 : index
      %14 = vector.load %arg4[%c0_11, %c0_12, %c0_13] : memref<1x8x128xf32, #tpu.memory_space<vmem>>, vector<1x8x128xf32>
      tpu.vector_store %arg4[%c0_11, %c0_12, %c0_13], %13 {strides = array<i32>} : memref<1x8x128xf32, #tpu.memory_space<vmem>>, vector<1x8x128xf32>,
    } else {
    }
    %c0 = arith.constant 0 : index
    %c0_1 = arith.constant 0 : index
    %3 = vector.load %arg2[%c0, %c0_1] : memref<16x128xf32, #tpu.memory_space<vmem>>, vector<16x128xf32>
    %c0_2 = arith.constant 0 : index
    %c0_3 = arith.constant 0 : index
    %4 = vector.load %arg3[%c0_2, %c0_3] : memref<16x128xf32, #tpu.memory_space<vmem>>, vector<16x128xf32>
    %5 = arith.subf %3, %4 : vector<16x128xf32>
    %6 = arith.mulf %5, %5 : vector<16x128xf32>
    %7 = vector.shape_cast %6 : vector<16x128xf32> to vector<2x8x128xf32>
    %cst = arith.constant dense<0.000000e+00> : vector<8x128xf32>
    %8 = vector.multi_reduction <add>, %7, %cst [0] : vector<2x8x128xf32> to vector<8x128xf32>
    %c0_4 = arith.constant 0 : index
    %c0_5 = arith.constant 0 : index
    %c0_6 = arith.constant 0 : index
    %9 = vector.load %arg4[%c0_4, %c0_5, %c0_6] : memref<1x8x128xf32, #tpu.memory_space<vmem>>, vector<1x8x128xf32>
    %10 = vector.shape_cast %8 : vector<8x128xf32> to vector<1x8x128xf32>
    %11 = arith.addf %9, %10 : vector<1x8x128xf32>
    %c0_7 = arith.constant 0 : index
    %c0_8 = arith.constant 0 : index
    %c0_9 = arith.constant 0 : index
    %12 = vector.load %arg4[%c0_7, %c0_8, %c0_9] : memref<1x8x128xf32, #tpu.memory_space<vmem>>, vector<1x8x128xf32>
    tpu.vector_store %arg4[%c0_7, %c0_8, %c0_9], %11 {strides = array<i32>} : memref<1x8x128xf32, #tpu.memory_space<vmem>>, vector<1x8x128xf32>,
    return
  }
  func.func @transform_0(%arg0: i32, %arg1: i32) -> (i32, i32) {
    %c1_i32 = arith.constant 1 : i32
    %0 = arith.muli %arg0, %c1_i32 : i32
    %1 = arith.addi %0, %arg1 : i32
    %c0_i32 = arith.constant 0 : i32
    %2 = arith.minsi %1, %c0_i32 : i32
    %c0_i32_0 = arith.constant 0 : i32
    %c0_i32_1 = arith.constant 0 : i32
    return %2, %c0_i32_0 : i32, i32
  }
  func.func @transform_1(%arg0: i32, %arg1: i32) -> (i32, i32) {
    %c1_i32 = arith.constant 1 : i32
    %0 = arith.muli %arg0, %c1_i32 : i32
    %1 = arith.addi %0, %arg1 : i32
    %c0_i32 = arith.constant 0 : i32
    %2 = arith.minsi %1, %c0_i32 : i32
    %c0_i32_0 = arith.constant 0 : i32
    %c0_i32_1 = arith.constant 0 : i32
    return %2, %c0_i32_0 : i32, i32
  }
  func.func @transform_2(%arg0: i32, %arg1: i32) -> (i32, i32, i32) {
    %c0_i32 = arith.constant 0 : i32
    %c0_i32_0 = arith.constant 0 : i32
    %c0_i32_1 = arith.constant 0 : i32
    return %arg0, %c0_i32, %c0_i32_0 : i32, i32, i32
  }
}

</mosaic_0001>

<bundles_post_ra>
// kernel: tpu_custom_call.1
= control target key start
LH: loop header
LB: loop body
LE: loop exit
PB: predicated region body
PF: predicated region fallthrough
CT: control target
= control target key end

     0   :  { %7 = vsyncpa [#allocation3], 0  ;;  %s231_s0 = inlined_call_operand.hbm [shape: f32[16,128], index: 0, kind: input, shape index: {}]   ;;  %s232_s1 = inlined_call_operand.hbm [shape: f32[16,128], index: 1, kind: input, shape index: {}]   ;;  %s233_s2 = inlined_call_operand.hbm [shape: f32[1,8,128], index: 2, kind: output, shape index: {}]  }
   0x1   :  { %8 = vsyncpa [#allocation6], 0 }
   0x2   :  { %9 = vsyncpa [#allocation4], 0  ;;  %s175_s9 = smov [#allocation2]   ;;  %s103_s13 = scalar_lea.hbm %s231_s0, 256 }
   0x3   :  { %s21_s10 = sshll.u32 %s175_s9, 4  ;;  %p104_p0 = scmp.ne.s32.totalorder %s231_s0, %s103_s13  ;;  %s22_s10 = int_to_ptr.vmem [resolvable:$true] %s21_s10 }
   0x4   :  { %p107_p1 = scmp.lt.u32.totalorder %s103_s13, %s231_s0 }
   0x6   :  { %p109_p2 = pnand %p107_p1, %p104_p0 }
   0x8   :  { %112 = shalt.err (!%p109_p2)
}
   0x9   :  { %s113_s18 = scalar_lea.vmem %s22_s10, 256  ;;  %p118_p4 = scmp.lt.s32.totalorder %s22_s10, %s22_s10 }
   0xa   :  { %p114_p3 = scmp.ne.s32.totalorder %s22_s10, %s113_s18  ;;  %p119_p5 = scmp.lt.s32.totalorder %s113_s18, %s113_s18 }
   0xc   :  { %p120_p6 = por %p119_p5, %p118_p4 }
   0xe   :  { %p121_p7 = pnand %p120_p6, %p114_p3 }
  0x10   :  { %124 = shalt.err (!%p121_p7)
}
  0x11   :  { %s176_s19 = smov 128   ;;  %s177_s20 = smov 8  }
  0x12   :  { %27 = dma.hbm_to_vmem [thread:$0]  %s231_s0, 256, %s22_s10, [#allocation3], %s176_s19, %s176_s19, %s177_s20  }
  0x13   :  { %s178_s23 = smov [#allocation5]   ;;  %s125_s27 = scalar_lea.hbm %s232_s1, 256 }
  0x14   :  { %s39_s24 = sshll.u32 %s178_s23, 4  ;;  %p126_p8 = scmp.ne.s32.totalorder %s232_s1, %s125_s27  ;;  %s40_s24 = int_to_ptr.vmem [resolvable:$true] %s39_s24 }
  0x15   :  { %p129_p9 = scmp.lt.u32.totalorder %s125_s27, %s232_s1 }
  0x17   :  { %p131_p10 = pnand %p129_p9, %p126_p8 }
  0x19   :  { %134 = shalt.err (!%p131_p10)
}
  0x1a   :  { %s135_s4 = scalar_lea.vmem %s40_s24, 256  ;;  %p140_p12 = scmp.lt.s32.totalorder %s40_s24, %s40_s24 }
  0x1b   :  { %p136_p11 = scmp.ne.s32.totalorder %s40_s24, %s135_s4  ;;  %p141_p13 = scmp.lt.s32.totalorder %s135_s4, %s135_s4 }
  0x1d   :  { %p142_p0 = por %p141_p13, %p140_p12 }
  0x1f   :  { %p143_p1 = pnand %p142_p0, %p136_p11 }
  0x21   :  { %146 = shalt.err (!%p143_p1)
}
  0x22   :  { %45 = dma.hbm_to_vmem [thread:$0]  %s232_s1, 256, %s40_s24, [#allocation6], %s176_s19, %s176_s19, %s177_s20  }
  0x23   :  { %169 = dma.done.wait [#allocation3], 256  }
  0x24   :  { %170 = vsyncadd [#allocation3], 4294967040 }
  0x25   :  { %171 = dma.done.wait [#allocation6], 256  }
  0x26   :  { %172 = vsyncadd [#allocation6], 4294967040  ;;  %v65_v0 = vld [vmem:[#allocation2] sm:$0xff]  ;;  %v66_v1 = vld [vmem:[#allocation2 + $0x8] sm:$0xff]  ;;  %s179_s6 = smov [#allocation7]  }
  0x27   :  { %v67_v2 = vld [vmem:[#allocation5] sm:$0xff]  ;;  %v68_v3 = vld [vmem:[#allocation5 + $0x8] sm:$0xff]  ;;  %s83_s7 = sshll.u32 %s179_s6, 4  ;;  %s84_s7 = int_to_ptr.vmem [resolvable:$true] %s83_s7 }
  0x28   :  { %v69_v4 = vsub.f32 %v65_v0, %v67_v2  ;;  %v70_v5 = vsub.f32 %v66_v1, %v68_v3  ;;  %s147_s8 = scalar_lea.vmem %s84_s7, 128  ;;  %p152_p3 = scmp.lt.s32.totalorder %s84_s7, %s84_s7 }
  0x29   :  { %p148_p2 = scmp.ne.s32.totalorder %s84_s7, %s147_s8  ;;  %p153_p4 = scmp.lt.s32.totalorder %s147_s8, %s147_s8 }
  0x2a   :  { %v71_v6 = vmul.f32 %v69_v4, %v69_v4  ;;  %v72_v7 = vmul.f32 %v70_v5, %v70_v5 }
  0x2b   :  { %p154_p5 = por %p153_p4, %p152_p3 }
  0x2c   :  { %v73_v8 = vadd.f32 %v72_v7, %v71_v6 }
  0x2d   :  { %p155_p6 = pnand %p154_p5, %p148_p2 }
  0x2e   :  { %76 = vst [vmem:[#allocation7] sm:$0xff] %v73_v8 }
  0x2f   :  { %158 = shalt.err (!%p155_p6)
}
  0x30   :  { %s159_s10 = scalar_lea.hbm %s233_s2, 128 }
  0x31   :  { %p160_p7 = scmp.ne.s32.totalorder %s233_s2, %s159_s10  ;;  %p163_p8 = scmp.lt.u32.totalorder %s159_s10, %s233_s2 }
  0x33   :  { %p165_p9 = pnand %p163_p8, %p160_p7 }
  0x35   :  { %168 = shalt.err (!%p165_p9)
}
  0x36   :  { %86 = dma.vmem_to_hbm [thread:$0]  %s84_s7, 128, %s233_s2, [#allocation4]  }
  0x37   :  { %173 = dma.done.wait [#allocation4], 128  }
  0x38   :  { %174 = vsyncadd [#allocation4], 4294967168 }
  0x39   :  { %90 = vsyncpa [#allocation3], 1 }
  0x3a   :  { %91 = vsyncpa [#allocation6], 1 }
  0x3b   :  { %92 = vsyncpa [#allocation4], 1 }

</bundles_post_ra>
